<compile_context>
chip_gen: v5e
topology: v5e:2x2
jax: 0.10.0
libtpu: 0.0.40
codegen_flags: <defaults>
</compile_context>

<pallas_src>
import jax
import jax.numpy as jnp
from jax.experimental import pallas as pl
from jax.experimental.pallas import tpu as pltpu


def _round_up(x, m):
    return ((x + m - 1) // m) * m


def _token_linear_kernel(x_ref, w_ref, b_ref, o_ref):
    # MXU matmul with f32 accumulation; f32 bias add; cast on store.
    acc = jnp.dot(x_ref[...], w_ref[...], preferred_element_type=jnp.float32)
    o_ref[...] = (acc + b_ref[...].astype(jnp.float32)).astype(o_ref.dtype)


def _choose_tm(m_rows, in_cols, out_cols, in_itemsize, out_itemsize,
               budget_bytes=24 * 1024 * 1024):
    """Token-tile rows so double-buffered x/out tiles fit the VMEM budget.

    The VMEM footprint counts lane padding: the last dim of each tile is
    padded to a multiple of 128 lanes regardless of its logical width.
    """
    per_row = 2 * (_round_up(in_cols, 128) * in_itemsize
                   + _round_up(out_cols, 128) * out_itemsize)
    tm = budget_bytes // max(per_row, 1)
    tm = int(max(8, min(tm, 8192)))   # big tiles amortize ~0.35us/step overhead
    tm -= tm % 8
    if m_rows <= tm:
        # For moderate/large M still emit >=2 grid steps so BlockSpec
        # double-buffering overlaps DMA with compute and the v7x megacore can
        # shard the "parallel" token axis across both TensorCores.
        if m_rows >= 4096:
            return min(tm, _round_up((m_rows + 1) // 2, 8))
        return m_rows                 # tiny M: full extent (always legal)
    return tm


def prepare_token_linear_params(weight, bias, num_tokens):
    """Build the kernel-side weight/bias slabs ONCE (cache alongside params).

    weight: (d_model, c_in) in torch nn.Linear layout; bias: (d_model,).
    Returns (w_slab, b_slab, fold) where `fold` is the number of tokens packed
    per 128-lane output row (1 = no folding).
    """
    d_model, c_in = weight.shape
    fold = 1
    if d_model < 128 and 128 % d_model == 0:
        k = 128 // d_model
        if num_tokens % k == 0:
            fold = k
    if fold == 1:
        w_slab = weight.T                                  # (c_in, d_model)
        b_slab = bias.reshape(1, d_model)
    else:
        # Block-diagonal weight folds `fold` tokens into one lane-dense
        # 128-wide output row: (M/fold, 128) is the row-major reshape of
        # (M, d_model) -> no output padding bytes, unmasked stores.
        eye = jnp.eye(fold, dtype=weight.dtype)
        w_slab = jnp.kron(eye, weight.T)                   # (fold*c_in, fold*d_model)
        b_slab = jnp.tile(bias, fold).reshape(1, fold * d_model)
    return w_slab, b_slab, fold


def token_linear_embedding_apply(x, w_slab, b_slab, fold):
    """y = Linear(x) using prepared slabs. x: (..., c_in) -> (..., d_model)."""
    *lead, c_in = x.shape
    M = 1
    for d in lead:
        M *= d

    k_cols, n_cols = w_slab.shape
    d_model = n_cols // fold
    assert k_cols == fold * c_in, "prepared weight does not match x's c_in"
    assert M % fold == 0

    m_rows = M // fold
    x_slab = x.reshape(m_rows, k_cols)                     # row-major, free

    x_item = jnp.dtype(x.dtype).itemsize
    out_dtype = x.dtype
    out_item = jnp.dtype(out_dtype).itemsize
    TM = _choose_tm(m_rows, k_cols, n_cols, x_item, out_item)
    grid_m = pl.cdiv(m_rows, TM)

    cost = pl.CostEstimate(
        flops=2 * m_rows * k_cols * n_cols,
        transcendentals=0,
        bytes_accessed=(x_slab.size * x_item
                        + w_slab.size * jnp.dtype(w_slab.dtype).itemsize
                        + b_slab.size * jnp.dtype(b_slab.dtype).itemsize
                        + m_rows * n_cols * out_item),
    )

    out_slab = pl.pallas_call(
        _token_linear_kernel,
        out_shape=jax.ShapeDtypeStruct((m_rows, n_cols), out_dtype),
        grid_spec=pltpu.PrefetchScalarGridSpec(
            num_scalar_prefetch=0,
            grid=(grid_m,),
            in_specs=[
                pl.BlockSpec((TM, k_cols), lambda i: (i, 0)),      # streamed tokens
                pl.BlockSpec((k_cols, n_cols), lambda i: (0, 0)),  # resident weight
                pl.BlockSpec((1, n_cols), lambda i: (0, 0)),       # resident bias
            ],
            out_specs=pl.BlockSpec((TM, n_cols), lambda i: (i, 0)),
        ),
        compiler_params=pltpu.CompilerParams(
            dimension_semantics=("parallel",),   # pure map -> megacore-shardable
            vmem_limit_bytes=32 * 1024 * 1024,   # safe on v5e/v6e/v7x defaults
        ),
        cost_estimate=cost,
    )(x_slab, w_slab, b_slab)

    # Row-major reshape; exact inverse of the token fold. No slicing needed.
    return out_slab.reshape(*lead, d_model)


def token_linear_embedding(x, weight, bias):
    """Convenience wrapper: y = x @ weight.T + bias over the last dim."""
    *lead, _ = x.shape
    M = 1
    for d in lead:
        M *= d
    w_slab, b_slab, fold = prepare_token_linear_params(weight, bias, M)
    return token_linear_embedding_apply(x, w_slab, b_slab, fold)


if __name__ == "__main__":
    # Small shapes consistent with the module's forward: x: (batch, seq, c_in)
    B, L, c_in, d_model = 2, 8, 4, 32

    key = jax.random.PRNGKey(0)
    kx, kw, kb = jax.random.split(key, 3)

    x = jax.random.normal(kx, (B, L, c_in), dtype=jnp.float32)
    bound = 1.0 / jnp.sqrt(c_in)
    weight = jax.random.uniform(kw, (d_model, c_in), jnp.float32, -bound, bound)
    bias = jax.random.uniform(kb, (d_model,), jnp.float32, -bound, bound)

    # --- f32, folded lane-dense path (d_model=32 -> fold=4) ---
    y = jax.block_until_ready(token_linear_embedding(x, weight, bias))
    y_ref = x @ weight.T + bias
    assert y.shape == (B, L, d_model)
    assert jnp.allclose(y, y_ref, atol=1e-5, rtol=1e-5)

    # --- bf16 activations/weights (f32 accumulation + bias add in-kernel) ---
    x_bf = x.astype(jnp.bfloat16)
    w_bf = weight.astype(jnp.bfloat16)
    y_bf = jax.block_until_ready(token_linear_embedding(x_bf, w_bf, bias))
    y_bf_ref = (x_bf.astype(jnp.float32) @ w_bf.T.astype(jnp.float32) + bias)
    assert y_bf.dtype == jnp.bfloat16
    assert jnp.allclose(y_bf.astype(jnp.float32), y_bf_ref, atol=2e-2, rtol=2e-2)

    # --- unfolded path (d_model not a divisor of 128): true-width output ---
    d_model2 = 144
    kw2, kb2 = jax.random.split(jax.random.PRNGKey(1))
    weight2 = jax.random.uniform(kw2, (d_model2, c_in), jnp.float32, -bound, bound)
    bias2 = jax.random.uniform(kb2, (d_model2,), jnp.float32, -bound, bound)
    y2 = jax.block_until_ready(token_linear_embedding(x, weight2, bias2))
    y2_ref = x @ weight2.T + bias2
    assert y2.shape == (B, L, d_model2)
    assert jnp.allclose(y2, y2_ref, atol=1e-5, rtol=1e-5)

    print("KERNEL_OK")
</pallas_src>

<mosaic_0001>
module attributes {stable_mosaic.version = 11 : i64} {
  func.func @_token_linear_kernel(%arg0: i32, %arg1: memref<4x16xf32, #tpu.memory_space<vmem>>, %arg2: memref<16x128xf32, #tpu.memory_space<vmem>>, %arg3: memref<1x128xf32, #tpu.memory_space<vmem>>, %arg4: memref<4x128xf32, #tpu.memory_space<vmem>>) attributes {dimension_semantics = [#tpu.dimension_semantics<parallel>], iteration_bounds = array<i64: 1>, scalar_prefetch = 0 : i64, scratch_operands = 0 : i64, tpu.core_type = #tpu.core_type<tc>, window_params = [{transform_indices = @transform_0, window_bounds = array<i64: 4, 16>}, {pipeline_mode = #tpu.pipeline_mode<synchronous>, transform_indices = @transform_1, window_bounds = array<i64: 16, 128>}, {pipeline_mode = #tpu.pipeline_mode<synchronous>, transform_indices = @transform_2, window_bounds = array<i64: 1, 128>}, {transform_indices = @transform_3, window_bounds = array<i64: 4, 128>}]} {
    %c0 = arith.constant 0 : index
    %c0_0 = arith.constant 0 : index
    %0 = vector.load %arg1[%c0, %c0_0] : memref<4x16xf32, #tpu.memory_space<vmem>>, vector<4x16xf32>
    %c0_1 = arith.constant 0 : index
    %c0_2 = arith.constant 0 : index
    %1 = vector.load %arg2[%c0_1, %c0_2] : memref<16x128xf32, #tpu.memory_space<vmem>>, vector<16x128xf32>
    %cst = arith.constant dense<0.000000e+00> : vector<4x128xf32>
    %2 = tpu.matmul %0, %1, %cst {dimension_numbers = #tpu.dot_dimension_numbers<[1], [0], [0], [1], [0, 0, 1, 1], [], []>} : vector<4x16xf32>, vector<16x128xf32>, vector<4x128xf32> -> vector<4x128xf32>
    %c0_3 = arith.constant 0 : index
    %c0_4 = arith.constant 0 : index
    %3 = vector.load %arg3[%c0_3, %c0_4] : memref<1x128xf32, #tpu.memory_space<vmem>>, vector<1x128xf32>
    %4 = vector.broadcast %3 : vector<1x128xf32> to vector<4x128xf32>
    %5 = arith.addf %2, %4 : vector<4x128xf32>
    %c0_5 = arith.constant 0 : index
    %c0_6 = arith.constant 0 : index
    %6 = vector.load %arg4[%c0_5, %c0_6] : memref<4x128xf32, #tpu.memory_space<vmem>>, vector<4x128xf32>
    tpu.vector_store %arg4[%c0_5, %c0_6], %5 {strides = array<i32>} : memref<4x128xf32, #tpu.memory_space<vmem>>, vector<4x128xf32>,
    return
  }
  func.func @transform_0(%arg0: i32) -> (i32, i32) {
    %c0_i32 = arith.constant 0 : i32
    %c0_i32_0 = arith.constant 0 : i32
    return %arg0, %c0_i32 : i32, i32
  }
  func.func @transform_1(%arg0: i32) -> (i32, i32) {
    %c0_i32 = arith.constant 0 : i32
    %c0_i32_0 = arith.constant 0 : i32
    %c0_i32_1 = arith.constant 0 : i32
    return %c0_i32, %c0_i32_0 : i32, i32
  }
  func.func @transform_2(%arg0: i32) -> (i32, i32) {
    %c0_i32 = arith.constant 0 : i32
    %c0_i32_0 = arith.constant 0 : i32
    %c0_i32_1 = arith.constant 0 : i32
    return %c0_i32, %c0_i32_0 : i32, i32
  }
  func.func @transform_3(%arg0: i32) -> (i32, i32) {
    %c0_i32 = arith.constant 0 : i32
    %c0_i32_0 = arith.constant 0 : i32
    return %arg0, %c0_i32 : i32, i32
  }
}

</mosaic_0001>

<bundles_post_ra>
// kernel: tpu_custom_call.1
= control target key start
LH: loop header
LB: loop body
LE: loop exit
PB: predicated region body
PF: predicated region fallthrough
CT: control target
= control target key end

     0   :  { %8 = vsyncpa [#allocation3], 0  ;;  %s217_s0 = inlined_call_operand.hbm [shape: f32[4,16], index: 0, kind: input, shape index: {}]   ;;  %s218_s1 = inlined_call_operand.hbm [shape: f32[16,128], index: 1, kind: input, shape index: {}]   ;;  %s219_s2 = inlined_call_operand.vmem [shape: f32[1,128], index: 2, kind: input, shape index: {}]   ;;  %s220_s3 = inlined_call_operand.hbm [shape: f32[4,128], index: 3, kind: output, shape index: {}]  }
   0x1   :  { %9 = vsyncpa [#allocation6], 0 }
   0x2   :  { %10 = vsyncpa [#allocation4], 0  ;;  %s16_s14 = sshll.u32 %s217_s0, 4  ;;  %s180_s15 = smov [#allocation2]   ;;  %s17_s14 = int_to_ptr.hbm [resolvable:$true] %s16_s14 }
   0x3   :  { %s18_s16 = sshll.u32 %s180_s15, 4  ;;  %s26_s19 = sshll.u32 %s218_s1, 4  ;;  %s19_s16 = int_to_ptr.vmem [resolvable:$true] %s18_s16  ;;  %s27_s19 = int_to_ptr.hbm [resolvable:$true] %s26_s19 }
   0x4   :  { %21 = dma.hbm_to_vmem [thread:$0]  %s17_s14, 64, %s19_s16, [#allocation3]  }
   0x5   :  { %s181_s20 = smov [#allocation5]   ;;  %s182_s22 = smov 128  }
   0x6   :  { %s28_s21 = sshll.u32 %s181_s20, 4  ;;  %s183_s23 = smov 8   ;;  %s29_s21 = int_to_ptr.vmem [resolvable:$true] %s28_s21 }
   0x7   :  { %34 = dma.hbm_to_vmem [thread:$0]  %s27_s19, 256, %s29_s21, [#allocation6], %s182_s22, %s182_s22, %s183_s23  }
   0x8   :  { %174 = dma.done.wait [#allocation3], 64  }
   0x9   :  { %175 = vsyncadd [#allocation3], 4294967232 }
   0xa   :  { %176 = dma.done.wait [#allocation6], 256  }
   0xb   :  { %177 = vsyncadd [#allocation6], 4294967040  ;;  %v47_v0 = vld [vmem:[#allocation5 + $0x8] sm:$0xff]  ;;  %v46_v1 = vld [vmem:[#allocation5] sm:$0xff]  ;;  %vm52_vm0 = vcmask 130048   ;;  %s184_s24 = smov [#allocation7]  }
   0xc   :  { %70 = vmatpush.msra.mxu0 %v47_v0  ;;  %v45_v2 = vld [vmem:[#allocation2] sm:$0xf]  ;;  %s82_s25 = sshll.u32 %s184_s24, 4  ;;  %s84_s28 = sshll.u32 %s220_s3, 4  ;;  %s83_s25 = int_to_ptr.vmem [resolvable:$true] %s82_s25  ;;  %s85_s28 = int_to_ptr.hbm [resolvable:$true] %s84_s28 }
   0xd   :  { %v101_v3 = vld [vmem:[%s219_s2] ss:$0 sm:$0xff] }
   0xe   :  { %71 = vmatpush.msra.mxu0 %v46_v1 }
   0xf   :  { %95 = vmatmul.msk.f32.vlgmr.msra.gmra.mxu0 %vm52_vm0, %v45_v2 }
  0x8c   :  { %v73_v4 = vpop.f32.mrf.mxu0 }
  0x8d   :  { %v74_v5 = vadd.f32 %v101_v3, %v73_v4 }
  0x8f   :  { %76 = vst [vmem:[#allocation7] sm:$0xf] %v74_v5 }
  0x90   :  { %87 = dma.vmem_to_hbm [thread:$0]  %s83_s25, 64, %s85_s28, [#allocation4]  }
  0x91   :  { %178 = dma.done.wait [#allocation4], 64  }
  0x92   :  { %179 = vsyncadd [#allocation4], 4294967232 }
  0x93   :  { %92 = vsyncpa [#allocation3], 1 }
  0x94   :  { %93 = vsyncpa [#allocation6], 1 }
  0x95   :  { %94 = vsyncpa [#allocation4], 1 }

</bundles_post_ra>
